<compile_context>
chip_gen: v6e
topology: v6e:2x2x1
jax: 0.10.0
libtpu: 0.0.40
codegen_flags: <defaults>
</compile_context>

<pallas_src>
from functools import partial

import jax
import jax.numpy as jnp
from jax.experimental import pallas as pl
from jax.experimental.pallas import tpu as pltpu


def _dwconv_kernel(*refs, k, d, pad, H, W, CB, compute_dtype, has_col_input):
    """Depthwise dilated 'same' (stride-1) conv on a lane-dense flat tile.

    refs (in order):
      w_ref:   (C_pad, k*k)  compact per-channel weights (resident, compute dtype)
      col_ref: (1, HWp)      flat->W map (only when W is not a power of two)
      x_ref:   (CB, HWp)     one (batch, channel-block) tile, H*W flattened+padded
      o_ref:   (CB, HWp)
    """
    if has_col_input:
        w_ref, col_ref, x_ref, o_ref = refs
    else:
        w_ref, x_ref, o_ref = refs
        col_ref = None

    HWp = x_ref.shape[-1]

    x = x_ref[...]
    if x.dtype != compute_dtype:
        x = x.astype(compute_dtype)          # one up-front convert (v5e bf16 path)

    # This grid step's channel block of the resident compact weight array.
    wstart = pl.multiple_of(pl.program_id(1) * CB, 8)
    w = w_ref[pl.ds(wstart, CB), :]           # (CB, k*k)

    # ---- halo masks, hoisted & combined once (k*k of them) -----------------
    flat = jax.lax.broadcasted_iota(jnp.int32, (1, HWp), 1)
    if col_ref is None:
        col = jnp.bitwise_and(flat, W - 1)    # W is a power of two
    else:
        col = col_ref[...]

    masks = []
    for kh in range(k):
        dh = kh * d - pad
        mh = (flat >= max(0, -dh) * W) & (flat < (H - max(0, dh)) * W)
        for kw in range(k):
            dw = kw * d - pad
            if dh == 0 and dw == 0:
                masks.append(None)            # only fully-interior tap
            else:
                mw = (col >= max(0, -dw)) & (col < W - max(0, dw))
                masks.append(mh & mw)

    # ---- k*k taps: one big row roll per kh, small +/-d lane rolls per kw ---
    acc = jnp.zeros(x.shape, jnp.float32)
    for kh in range(k):
        dh = kh * d - pad
        sh_row = (-(dh * W)) % HWp
        xrow = pltpu.roll(x, shift=sh_row, axis=1) if sh_row else x
        for kw in range(k):
            dw = kw * d - pad
            sh_col = (-dw) % HWp
            xs = pltpu.roll(xrow, shift=sh_col, axis=1) if sh_col else xrow
            m = masks[kh * k + kw]
            if m is not None:
                xs = jnp.where(m, xs, 0)
            wt = w[:, kh * k + kw:kh * k + kw + 1]       # (CB, 1) -> bcast lanes
            acc = acc + (xs * wt).astype(jnp.float32)
    o_ref[...] = acc.astype(o_ref.dtype)


def _vmem_capacity_bytes():
    """Physical per-TensorCore VMEM (v5e/v6e: 128 MiB, v7x: 64 MiB)."""
    try:
        return int(pltpu.get_tpu_info().vmem_capacity_bytes)
    except Exception:
        return 64 * 1024 * 1024               # conservative default (v7x)


def _is_v5_device():
    try:
        return "v5" in jax.devices()[0].device_kind.lower()
    except Exception:
        return False


def channelwise_dilated_conv(x, weight, *, kSize, stride=1, d=1):
    """Pallas implementation of ChannelWiseDilatedConv.forward.

    x:      (N, C, H, W)          NCHW activations
    weight: (C, 1, kSize, kSize)  depthwise conv weight (nOut == nIn == C)
    """
    N, C, H, W = x.shape
    assert weight.shape == (C, 1, kSize, kSize), "depthwise: nOut == nIn"
    assert kSize % 2 == 1, "padding = ((k-1)//2)*d assumes odd kernel size"

    pad = ((kSize - 1) // 2) * d
    HW = H * W
    HWp = -(-HW // 128) * 128                 # lane-dense output stores
    C_pad = -(-C // 8) * 8                    # clean (8,128) tiling

    # Compute dtype: bf16 multiplies on v6e/v7x (native bf16 VPU); f32 on v5e.
    compute_dtype = x.dtype
    if x.dtype == jnp.bfloat16 and _is_v5_device():
        compute_dtype = jnp.float32
    elif x.dtype not in (jnp.float32, jnp.bfloat16):
        compute_dtype = jnp.float32

    in_b = jnp.dtype(x.dtype).itemsize
    comp_b = jnp.dtype(compute_dtype).itemsize

    # ---- channel-block sizing from the per-generation VMEM budget ----------
    # Per-step residents per channel row: 2x double-buffered input block +
    # 2x double-buffered output block + f32 accumulator + ~2 tap temporaries.
    per_row = HWp * (4 * in_b + 4 + 2 * comp_b)
    vmem_phys = _vmem_capacity_bytes()
    budget = int(vmem_phys * 0.45)            # headroom for compiler scratch
    cb_budget = max(8, (budget // per_row) // 8 * 8)
    cb_cap = max(8, ((16 << 20) // (HWp * max(in_b, 4))) // 8 * 8)
    cb_limit = min(cb_budget, cb_cap, C_pad)
    CB = 8
    for cand in range(8, C_pad + 1, 8):
        if C_pad % cand == 0 and cand <= cb_limit:
            CB = cand
    # Keep >=4 parallel grid steps when possible (feeds both v7x TensorCores).
    while CB > 8 and N * (C_pad // CB) < 4:
        smaller = [cand for cand in range(8, CB, 8) if C_pad % cand == 0]
        if not smaller:
            break
        CB = smaller[-1]

    # Free-ish HBM-level relayouts: flatten spatial dims, pad C/HW, compact w.
    x3 = x.reshape(N, C, HW)
    if C_pad != C or HWp != HW:
        x3 = jnp.pad(x3, ((0, 0), (0, C_pad - C), (0, HWp - HW)))
    w2 = weight[:, 0, :, :].reshape(C, kSize * kSize).astype(compute_dtype)
    if C_pad != C:
        w2 = jnp.pad(w2, ((0, C_pad - C), (0, 0)))

    w_pow2 = (W & (W - 1)) == 0
    args = [w2]
    in_specs = [pl.BlockSpec((C_pad, kSize * kSize), lambda n, c: (0, 0))]
    if not w_pow2:
        col_map = (jnp.arange(HWp, dtype=jnp.int32) % W).reshape(1, HWp)
        args.append(col_map)
        in_specs.append(pl.BlockSpec((1, HWp), lambda n, c: (0, 0)))
    args.append(x3)
    in_specs.append(pl.BlockSpec((None, CB, HWp), lambda n, c: (n, c, 0)))

    kernel = partial(_dwconv_kernel, k=kSize, d=d, pad=pad, H=H, W=W,
                     CB=CB, compute_dtype=compute_dtype,
                     has_col_input=not w_pow2)

    used_est = (CB * per_row
                + 2 * C_pad * kSize * kSize * comp_b
                + (kSize * kSize + 3) * HWp * 4)
    vmem_limit = int(min(vmem_phys * 0.9, max(32 << 20, 2 * used_est)))

    cost = pl.CostEstimate(
        flops=2 * kSize * kSize * N * C * HW,
        transcendentals=0,
        bytes_accessed=2 * N * C_pad * HWp * in_b + w2.size * comp_b,
    )

    out3 = pl.pallas_call(
        kernel,
        out_shape=jax.ShapeDtypeStruct((N, C_pad, HWp), x.dtype),
        grid=(N, C_pad // CB),
        in_specs=in_specs,
        out_specs=pl.BlockSpec((None, CB, HWp), lambda n, c: (n, c, 0)),
        compiler_params=pltpu.CompilerParams(
            dimension_semantics=("parallel", "parallel"),
            vmem_limit_bytes=vmem_limit,
        ),
        cost_estimate=cost,
    )(*args)

    out = out3[:, :C, :HW].reshape(N, C, H, W)
    if stride > 1:
        # Exact for odd-k 'same' padding (pad = ((k-1)//2)*d): the strided conv
        # equals the stride-1 result subsampled on the output grid.
        out = out[:, :, ::stride, ::stride]
    return out


def _reference(x, weight, *, kSize, stride, d):
    pad = ((kSize - 1) // 2) * d
    return jax.lax.conv_general_dilated(
        x, weight,
        window_strides=(stride, stride),
        padding=((pad, pad), (pad, pad)),
        rhs_dilation=(d, d),
        dimension_numbers=("NCHW", "OIHW", "NCHW"),
        feature_group_count=x.shape[1])


if __name__ == "__main__":
    key = jax.random.PRNGKey(0)

    # --- primary check: module config nIn=nOut=4, kSize=3, stride=1, d=2 ----
    nIn, kSize, stride, dilation = 4, 3, 1, 2
    N, H, W = 2, 16, 16
    kx, kw, key = jax.random.split(key, 3)
    x = jax.random.normal(kx, (N, nIn, H, W), dtype=jnp.float32)
    bound = 1.0 / (kSize * kSize) ** 0.5
    weight = jax.random.uniform(kw, (nIn, 1, kSize, kSize), dtype=jnp.float32,
                                minval=-bound, maxval=bound)

    out = channelwise_dilated_conv(x, weight, kSize=kSize, stride=stride,
                                   d=dilation)
    out = jax.block_until_ready(out)
    ref = _reference(x, weight, kSize=kSize, stride=stride, d=dilation)
    assert out.shape == ref.shape, (out.shape, ref.shape)
    assert jnp.allclose(out, ref, atol=1e-5, rtol=1e-5), \
        float(jnp.max(jnp.abs(out - ref)))

    # --- secondary check: C%8!=0, non-power-of-two W, HW%128!=0, stride=2 ---
    nIn2, kSize2, stride2, dilation2 = 6, 3, 2, 1
    N2, H2, W2 = 1, 8, 12
    kx2, kw2, key = jax.random.split(key, 3)
    x2 = jax.random.normal(kx2, (N2, nIn2, H2, W2), dtype=jnp.float32)
    weight2 = jax.random.uniform(kw2, (nIn2, 1, kSize2, kSize2),
                                 dtype=jnp.float32, minval=-bound, maxval=bound)
    out2 = channelwise_dilated_conv(x2, weight2, kSize=kSize2, stride=stride2,
                                    d=dilation2)
    out2 = jax.block_until_ready(out2)
    ref2 = _reference(x2, weight2, kSize=kSize2, stride=stride2, d=dilation2)
    assert out2.shape == ref2.shape, (out2.shape, ref2.shape)
    assert jnp.allclose(out2, ref2, atol=1e-5, rtol=1e-5), \
        float(jnp.max(jnp.abs(out2 - ref2)))

    print("KERNEL_OK")
</pallas_src>

<mosaic_0001>
module attributes {stable_mosaic.version = 11 : i64} {
  func.func @_dwconv_kernel(%arg0: i32, %arg1: i32, %arg2: memref<8x9xf32, #tpu.memory_space<vmem>>, %arg3: memref<1x8x256xf32, #tpu.memory_space<vmem>>, %arg4: memref<1x8x256xf32, #tpu.memory_space<vmem>>) attributes {dimension_semantics = [#tpu.dimension_semantics<parallel>, #tpu.dimension_semantics<parallel>], iteration_bounds = array<i64: 2, 1>, scalar_prefetch = 0 : i64, scratch_operands = 0 : i64, tpu.core_type = #tpu.core_type<tc>, window_params = [{pipeline_mode = #tpu.pipeline_mode<synchronous>, transform_indices = @transform_0, window_bounds = array<i64: 8, 9>}, {transform_indices = @transform_1, window_bounds = array<i64: 1, 8, 256>}, {transform_indices = @transform_2, window_bounds = array<i64: 1, 8, 256>}]} {
    %c0 = arith.constant 0 : index
    %c0_0 = arith.constant 0 : index
    %c0_1 = arith.constant 0 : index
    %0 = vector.load %arg3[%c0, %c0_0, %c0_1] : memref<1x8x256xf32, #tpu.memory_space<vmem>>, vector<1x8x256xf32>
    %1 = vector.shape_cast %0 : vector<1x8x256xf32> to vector<8x256xf32>
    %c8_i32 = arith.constant 8 : i32
    %2 = arith.muli %arg1, %c8_i32 : i32
    %3 = tpu.assume_multiple %2, 8 : i32
    %4 = arith.index_cast %3 : i32 to index
    %c0_2 = arith.constant 0 : index
    %5 = vector.load %arg2[%4, %c0_2] : memref<8x9xf32, #tpu.memory_space<vmem>>, vector<8x9xf32>
    %6 = tpu.iota {dimensions = array<i32: 1>} : vector<1x256xi32>
    %c15_i32 = arith.constant 15 : i32
    %7 = vector.broadcast %c15_i32 : i32 to vector<1x256xi32>
    %8 = arith.andi %6, %7 : vector<1x256xi32>
    %c32_i32 = arith.constant 32 : i32
    %9 = vector.broadcast %c32_i32 : i32 to vector<1x256xi32>
    %10 = arith.cmpi sge, %6, %9 : vector<1x256xi32>
    %c256_i32 = arith.constant 256 : i32
    %11 = vector.broadcast %c256_i32 : i32 to vector<1x256xi32>
    %12 = arith.cmpi slt, %6, %11 : vector<1x256xi32>
    %13 = arith.andi %10, %12 : vector<1x256xi1>
    %c2_i32 = arith.constant 2 : i32
    %14 = vector.broadcast %c2_i32 : i32 to vector<1x256xi32>
    %15 = arith.cmpi sge, %8, %14 : vector<1x256xi32>
    %c16_i32 = arith.constant 16 : i32
    %16 = vector.broadcast %c16_i32 : i32 to vector<1x256xi32>
    %17 = arith.cmpi slt, %8, %16 : vector<1x256xi32>
    %18 = arith.andi %15, %17 : vector<1x256xi1>
    %19 = arith.andi %13, %18 : vector<1x256xi1>
    %c0_i32 = arith.constant 0 : i32
    %20 = vector.broadcast %c0_i32 : i32 to vector<1x256xi32>
    %21 = arith.cmpi sge, %8, %20 : vector<1x256xi32>
    %c16_i32_3 = arith.constant 16 : i32
    %22 = vector.broadcast %c16_i32_3 : i32 to vector<1x256xi32>
    %23 = arith.cmpi slt, %8, %22 : vector<1x256xi32>
    %24 = arith.andi %21, %23 : vector<1x256xi1>
    %25 = arith.andi %13, %24 : vector<1x256xi1>
    %c0_i32_4 = arith.constant 0 : i32
    %26 = vector.broadcast %c0_i32_4 : i32 to vector<1x256xi32>
    %27 = arith.cmpi sge, %8, %26 : vector<1x256xi32>
    %c14_i32 = arith.constant 14 : i32
    %28 = vector.broadcast %c14_i32 : i32 to vector<1x256xi32>
    %29 = arith.cmpi slt, %8, %28 : vector<1x256xi32>
    %30 = arith.andi %27, %29 : vector<1x256xi1>
    %31 = arith.andi %13, %30 : vector<1x256xi1>
    %c0_i32_5 = arith.constant 0 : i32
    %32 = vector.broadcast %c0_i32_5 : i32 to vector<1x256xi32>
    %33 = arith.cmpi sge, %6, %32 : vector<1x256xi32>
    %c256_i32_6 = arith.constant 256 : i32
    %34 = vector.broadcast %c256_i32_6 : i32 to vector<1x256xi32>
    %35 = arith.cmpi slt, %6, %34 : vector<1x256xi32>
    %36 = arith.andi %33, %35 : vector<1x256xi1>
    %c2_i32_7 = arith.constant 2 : i32
    %37 = vector.broadcast %c2_i32_7 : i32 to vector<1x256xi32>
    %38 = arith.cmpi sge, %8, %37 : vector<1x256xi32>
    %c16_i32_8 = arith.constant 16 : i32
    %39 = vector.broadcast %c16_i32_8 : i32 to vector<1x256xi32>
    %40 = arith.cmpi slt, %8, %39 : vector<1x256xi32>
    %41 = arith.andi %38, %40 : vector<1x256xi1>
    %42 = arith.andi %36, %41 : vector<1x256xi1>
    %c0_i32_9 = arith.constant 0 : i32
    %43 = vector.broadcast %c0_i32_9 : i32 to vector<1x256xi32>
    %44 = arith.cmpi sge, %8, %43 : vector<1x256xi32>
    %c14_i32_10 = arith.constant 14 : i32
    %45 = vector.broadcast %c14_i32_10 : i32 to vector<1x256xi32>
    %46 = arith.cmpi slt, %8, %45 : vector<1x256xi32>
    %47 = arith.andi %44, %46 : vector<1x256xi1>
    %48 = arith.andi %36, %47 : vector<1x256xi1>
    %c0_i32_11 = arith.constant 0 : i32
    %49 = vector.broadcast %c0_i32_11 : i32 to vector<1x256xi32>
    %50 = arith.cmpi sge, %6, %49 : vector<1x256xi32>
    %c224_i32 = arith.constant 224 : i32
    %51 = vector.broadcast %c224_i32 : i32 to vector<1x256xi32>
    %52 = arith.cmpi slt, %6, %51 : vector<1x256xi32>
    %53 = arith.andi %50, %52 : vector<1x256xi1>
    %c2_i32_12 = arith.constant 2 : i32
    %54 = vector.broadcast %c2_i32_12 : i32 to vector<1x256xi32>
    %55 = arith.cmpi sge, %8, %54 : vector<1x256xi32>
    %c16_i32_13 = arith.constant 16 : i32
    %56 = vector.broadcast %c16_i32_13 : i32 to vector<1x256xi32>
    %57 = arith.cmpi slt, %8, %56 : vector<1x256xi32>
    %58 = arith.andi %55, %57 : vector<1x256xi1>
    %59 = arith.andi %53, %58 : vector<1x256xi1>
    %c0_i32_14 = arith.constant 0 : i32
    %60 = vector.broadcast %c0_i32_14 : i32 to vector<1x256xi32>
    %61 = arith.cmpi sge, %8, %60 : vector<1x256xi32>
    %c16_i32_15 = arith.constant 16 : i32
    %62 = vector.broadcast %c16_i32_15 : i32 to vector<1x256xi32>
    %63 = arith.cmpi slt, %8, %62 : vector<1x256xi32>
    %64 = arith.andi %61, %63 : vector<1x256xi1>
    %65 = arith.andi %53, %64 : vector<1x256xi1>
    %c0_i32_16 = arith.constant 0 : i32
    %66 = vector.broadcast %c0_i32_16 : i32 to vector<1x256xi32>
    %67 = arith.cmpi sge, %8, %66 : vector<1x256xi32>
    %c14_i32_17 = arith.constant 14 : i32
    %68 = vector.broadcast %c14_i32_17 : i32 to vector<1x256xi32>
    %69 = arith.cmpi slt, %8, %68 : vector<1x256xi32>
    %70 = arith.andi %67, %69 : vector<1x256xi1>
    %71 = arith.andi %53, %70 : vector<1x256xi1>
    %cst = arith.constant 0.000000e+00 : f32
    %72 = vector.broadcast %cst : f32 to vector<8x256xf32>
    %c32_i32_18 = arith.constant 32 : i32
    %73 = tpu.dynamic_rotate %1 by %c32_i32_18 dim 1 : vector<8x256xf32>, i32 -> vector<8x256xf32>
    %c2_i32_19 = arith.constant 2 : i32
    %74 = tpu.dynamic_rotate %73 by %c2_i32_19 dim 1 : vector<8x256xf32>, i32 -> vector<8x256xf32>
    %c0_i32_20 = arith.constant 0 : i32
    %75 = arith.sitofp %c0_i32_20 : i32 to f32
    %76 = vector.shape_cast %19 : vector<1x256xi1> to vector<1x256xi1>
    %77 = vector.broadcast %76 : vector<1x256xi1> to vector<8x256xi1>
    %78 = vector.broadcast %75 : f32 to vector<8x256xf32>
    %79 = arith.select %77, %74, %78 : vector<8x256xi1>, vector<8x256xf32>
    %80 = vector.extract_strided_slice %5 {offsets = [0, 0], sizes = [8, 1], strides = [1, 1]} : vector<8x9xf32> to vector<8x1xf32>
    %81 = vector.broadcast %80 : vector<8x1xf32> to vector<8x256xf32>
    %82 = arith.mulf %79, %81 : vector<8x256xf32>
    %83 = arith.addf %72, %82 : vector<8x256xf32>
    %c0_i32_21 = arith.constant 0 : i32
    %84 = arith.sitofp %c0_i32_21 : i32 to f32
    %85 = vector.shape_cast %25 : vector<1x256xi1> to vector<1x256xi1>
    %86 = vector.broadcast %85 : vector<1x256xi1> to vector<8x256xi1>
    %87 = vector.broadcast %84 : f32 to vector<8x256xf32>
    %88 = arith.select %86, %73, %87 : vector<8x256xi1>, vector<8x256xf32>
    %89 = vector.extract_strided_slice %5 {offsets = [0, 1], sizes = [8, 1], strides = [1, 1]} : vector<8x9xf32> to vector<8x1xf32>
    %90 = vector.broadcast %89 : vector<8x1xf32> to vector<8x256xf32>
    %91 = arith.mulf %88, %90 : vector<8x256xf32>
    %92 = arith.addf %83, %91 : vector<8x256xf32>
    %c254_i32 = arith.constant 254 : i32
    %93 = tpu.dynamic_rotate %73 by %c254_i32 dim 1 : vector<8x256xf32>, i32 -> vector<8x256xf32>
    %c0_i32_22 = arith.constant 0 : i32
    %94 = arith.sitofp %c0_i32_22 : i32 to f32
    %95 = vector.shape_cast %31 : vector<1x256xi1> to vector<1x256xi1>
    %96 = vector.broadcast %95 : vector<1x256xi1> to vector<8x256xi1>
    %97 = vector.broadcast %94 : f32 to vector<8x256xf32>
    %98 = arith.select %96, %93, %97 : vector<8x256xi1>, vector<8x256xf32>
    %99 = vector.extract_strided_slice %5 {offsets = [0, 2], sizes = [8, 1], strides = [1, 1]} : vector<8x9xf32> to vector<8x1xf32>
    %100 = vector.broadcast %99 : vector<8x1xf32> to vector<8x256xf32>
    %101 = arith.mulf %98, %100 : vector<8x256xf32>
    %102 = arith.addf %92, %101 : vector<8x256xf32>
    %c2_i32_23 = arith.constant 2 : i32
    %103 = tpu.dynamic_rotate %1 by %c2_i32_23 dim 1 : vector<8x256xf32>, i32 -> vector<8x256xf32>
    %c0_i32_24 = arith.constant 0 : i32
    %104 = arith.sitofp %c0_i32_24 : i32 to f32
    %105 = vector.shape_cast %42 : vector<1x256xi1> to vector<1x256xi1>
    %106 = vector.broadcast %105 : vector<1x256xi1> to vector<8x256xi1>
    %107 = vector.broadcast %104 : f32 to vector<8x256xf32>
    %108 = arith.select %106, %103, %107 : vector<8x256xi1>, vector<8x256xf32>
    %109 = vector.extract_strided_slice %5 {offsets = [0, 3], sizes = [8, 1], strides = [1, 1]} : vector<8x9xf32> to vector<8x1xf32>
    %110 = vector.broadcast %109 : vector<8x1xf32> to vector<8x256xf32>
    %111 = arith.mulf %108, %110 : vector<8x256xf32>
    %112 = arith.addf %102, %111 : vector<8x256xf32>
    %113 = vector.extract_strided_slice %5 {offsets = [0, 4], sizes = [8, 1], strides = [1, 1]} : vector<8x9xf32> to vector<8x1xf32>
    %114 = vector.broadcast %113 : vector<8x1xf32> to vector<8x256xf32>
    %115 = arith.mulf %1, %114 : vector<8x256xf32>
    %116 = arith.addf %112, %115 : vector<8x256xf32>
    %c254_i32_25 = arith.constant 254 : i32
    %117 = tpu.dynamic_rotate %1 by %c254_i32_25 dim 1 : vector<8x256xf32>, i32 -> vector<8x256xf32>
    %c0_i32_26 = arith.constant 0 : i32
    %118 = arith.sitofp %c0_i32_26 : i32 to f32
    %119 = vector.shape_cast %48 : vector<1x256xi1> to vector<1x256xi1>
    %120 = vector.broadcast %119 : vector<1x256xi1> to vector<8x256xi1>
    %121 = vector.broadcast %118 : f32 to vector<8x256xf32>
    %122 = arith.select %120, %117, %121 : vector<8x256xi1>, vector<8x256xf32>
    %123 = vector.extract_strided_slice %5 {offsets = [0, 5], sizes = [8, 1], strides = [1, 1]} : vector<8x9xf32> to vector<8x1xf32>
    %124 = vector.broadcast %123 : vector<8x1xf32> to vector<8x256xf32>
    %125 = arith.mulf %122, %124 : vector<8x256xf32>
    %126 = arith.addf %116, %125 : vector<8x256xf32>
    %c224_i32_27 = arith.constant 224 : i32
    %127 = tpu.dynamic_rotate %1 by %c224_i32_27 dim 1 : vector<8x256xf32>, i32 -> vector<8x256xf32>
    %c2_i32_28 = arith.constant 2 : i32
    %128 = tpu.dynamic_rotate %127 by %c2_i32_28 dim 1 : vector<8x256xf32>, i32 -> vector<8x256xf32>
    %c0_i32_29 = arith.constant 0 : i32
    %129 = arith.sitofp %c0_i32_29 : i32 to f32
    %130 = vector.shape_cast %59 : vector<1x256xi1> to vector<1x256xi1>
    %131 = vector.broadcast %130 : vector<1x256xi1> to vector<8x256xi1>
    %132 = vector.broadcast %129 : f32 to vector<8x256xf32>
    %133 = arith.select %131, %128, %132 : vector<8x256xi1>, vector<8x256xf32>
    %134 = vector.extract_strided_slice %5 {offsets = [0, 6], sizes = [8, 1], strides = [1, 1]} : vector<8x9xf32> to vector<8x1xf32>
    %135 = vector.broadcast %134 : vector<8x1xf32> to vector<8x256xf32>
    %136 = arith.mulf %133, %135 : vector<8x256xf32>
    %137 = arith.addf %126, %136 : vector<8x256xf32>
    %c0_i32_30 = arith.constant 0 : i32
    %138 = arith.sitofp %c0_i32_30 : i32 to f32
    %139 = vector.shape_cast %65 : vector<1x256xi1> to vector<1x256xi1>
    %140 = vector.broadcast %139 : vector<1x256xi1> to vector<8x256xi1>
    %141 = vector.broadcast %138 : f32 to vector<8x256xf32>
    %142 = arith.select %140, %127, %141 : vector<8x256xi1>, vector<8x256xf32>
    %143 = vector.extract_strided_slice %5 {offsets = [0, 7], sizes = [8, 1], strides = [1, 1]} : vector<8x9xf32> to vector<8x1xf32>
    %144 = vector.broadcast %143 : vector<8x1xf32> to vector<8x256xf32>
    %145 = arith.mulf %142, %144 : vector<8x256xf32>
    %146 = arith.addf %137, %145 : vector<8x256xf32>
    %c254_i32_31 = arith.constant 254 : i32
    %147 = tpu.dynamic_rotate %127 by %c254_i32_31 dim 1 : vector<8x256xf32>, i32 -> vector<8x256xf32>
    %c0_i32_32 = arith.constant 0 : i32
    %148 = arith.sitofp %c0_i32_32 : i32 to f32
    %149 = vector.shape_cast %71 : vector<1x256xi1> to vector<1x256xi1>
    %150 = vector.broadcast %149 : vector<1x256xi1> to vector<8x256xi1>
    %151 = vector.broadcast %148 : f32 to vector<8x256xf32>
    %152 = arith.select %150, %147, %151 : vector<8x256xi1>, vector<8x256xf32>
    %153 = vector.extract_strided_slice %5 {offsets = [0, 8], sizes = [8, 1], strides = [1, 1]} : vector<8x9xf32> to vector<8x1xf32>
    %154 = vector.broadcast %153 : vector<8x1xf32> to vector<8x256xf32>
    %155 = arith.mulf %152, %154 : vector<8x256xf32>
    %156 = arith.addf %146, %155 : vector<8x256xf32>
    %c0_33 = arith.constant 0 : index
    %c0_34 = arith.constant 0 : index
    %c0_35 = arith.constant 0 : index
    %157 = vector.load %arg4[%c0_33, %c0_34, %c0_35] : memref<1x8x256xf32, #tpu.memory_space<vmem>>, vector<1x8x256xf32>
    %158 = vector.shape_cast %157 : vector<1x8x256xf32> to vector<8x256xf32>
    %159 = vector.shape_cast %156 : vector<8x256xf32> to vector<1x8x256xf32>
    tpu.vector_store %arg4[%c0_33, %c0_34, %c0_35], %159 {strides = array<i32>} : memref<1x8x256xf32, #tpu.memory_space<vmem>>, vector<1x8x256xf32>,
    return
  }
  func.func @transform_0(%arg0: i32, %arg1: i32) -> (i32, i32) {
    %c0_i32 = arith.constant 0 : i32
    %c0_i32_0 = arith.constant 0 : i32
    %c0_i32_1 = arith.constant 0 : i32
    return %c0_i32, %c0_i32_0 : i32, i32
  }
  func.func @transform_1(%arg0: i32, %arg1: i32) -> (i32, i32, i32) {
    %c0_i32 = arith.constant 0 : i32
    %c0_i32_0 = arith.constant 0 : i32
    return %arg0, %arg1, %c0_i32 : i32, i32, i32
  }
  func.func @transform_2(%arg0: i32, %arg1: i32) -> (i32, i32, i32) {
    %c0_i32 = arith.constant 0 : i32
    %c0_i32_0 = arith.constant 0 : i32
    return %arg0, %arg1, %c0_i32 : i32, i32, i32
  }
}

</mosaic_0001>

<bundles_post_ra>
// kernel: tpu_custom_call.1
= control target key start
LH: loop header
LB: loop body
LE: loop exit
PB: predicated region body
PF: predicated region fallthrough
CT: control target
= control target key end

     0   :  { %7 = vsyncpa [#allocation3], 0  ;;  %s1136_s0 = inlined_call_operand.hbm [shape: f32[8,9], index: 0, kind: input, shape index: {}]   ;;  %s1137_s1 = inlined_call_operand.hbm [shape: f32[2,8,256], index: 1, kind: input, shape index: {}]   ;;  %s1138_s2 = inlined_call_operand.hbm [shape: f32[2,8,256], index: 2, kind: output, shape index: {}]  }
   0x1   :  { %8 = vsyncpa [#allocation6], 0 }
   0x2   :  { %10 = vsyncpa [#allocation6 + $0x1], 0 }
   0x3   :  { %11 = vsyncpa [#allocation4], 0 }
   0x4   :  { %13 = vsyncpa [#allocation4 + $0x1], 0  ;;  %s820_s9 = smov 0   ;;  %s822_s10 = smov 0  }
   0x5   :  { %s824_s11 = smov 0   ;;  %s826_s12 = smov 0  }
   0x6   :  { %s828_s13 = smov 0   ;;  %s830_s14 = smov 0  }
   0x7 LB: > { %s535_s15 = sadd.s32 4294967295, %s787_s14   ;;  %s536_s16 = sadd.s32 4294967294, %s787_s14   ;;  %s787_s14 = sphi %s830_s14, %s19_s14   ;;  %s783_s13 = sphi %s828_s13, %s1169_s13   ;;  %s779_s12 = sphi %s826_s12, %s1168_s12   ;;  %s775_s11 = sphi %s824_s11, %s1167_s11   ;;  %s771_s10 = sphi %s822_s10, %s1166_s10   ;;  %s767_s9 = sphi %s820_s9, %s1165_s9  }
   0x8   : > { %p74_p0 = scmp.ne.s32.totalorder %s771_s10, %s767_s9  ;;  %p854_p1 = scmp.eq.s32.totalorder %s535_s15, 0 }
   0x9   : > { %p858_p2 = scmp.eq.s32.totalorder %s535_s15, 1  ;;  %p106_p3 = scmp.eq.s32.totalorder %s536_s16, 1 }
   0xa   : > { %p864_p4 = por %p854_p1, %p74_p0  ;;  %p537_p5 = scmp.ge.s32.totalorder %s787_s14, 1 }
   0xb   : > { %p869_p6 = por %p106_p3, %p74_p0  ;;  %p113_p7 = scmp.lt.s32.totalorder %s787_s14, 3 }
   0xc   : > { %s1142_s19 = scalar_select %p864_p4, 1, 0 }
   0xd   : > { %s1143_s20 = scalar_select %p869_p6, 1, 0 }
   0xe   : > { %p874_p8 = pnand %p537_p5, %p113_p7  ;;  %s789_s22 = smov [#allocation2]  }
   0xf   : > { %s126_s23 = sshll.u32 %s789_s22, 4  ;;  %s31_s25 = sadd.s32 1, %s783_s13  ;;  %s127_s23 = int_to_ptr.vmem [resolvable:$true] %s126_s23 }
  0x10   : > { %p562_p10 = pneg %p874_p8  ;;  %s61_s26 = sadd.s32 1, %s775_s11 }
  0x11   : > { %p33_p12 = scmp.ge.s32.totalorder %s31_s25, 2  ;;  %s660_s27 = scalar_lea.vmem %s127_s23, 128 }
  0x12   : > { %p883_p11 = pnand %p562_p10, %p854_p1  ;;  %p661_p0 = scmp.ne.s32.totalorder %s127_s23, %s660_s27 }
  0x13   : > { %p668_p7 = scmp.lt.s32.totalorder %s127_s23, %s127_s23  ;;  %p669_p6 = scmp.lt.s32.totalorder %s660_s27, %s660_s27 }
  0x14   : > { %p651_p13 = pneg %p883_p11 }
  0x15   : > { %p670_p9 = por %p669_p6, %p668_p7 }
  0x16   : > { %p663_p3 = pnand %p661_p0, %p651_p13 }
  0x18   : > { %p664_p5 = pneg %p663_p3 }
  0x1a   : > { %p671_p4 = pnand %p670_p9, %p664_p5 }
  0x1c   : > { %674 = shalt.err (!%p671_p4)
}
  0x1d   : > { %565 = dma.hbm_to_vmem [thread:$0]  (!%p883_p11), %s1136_s0, 128, %s127_s23, [#allocation3]  }
  0x1e   : > { %s1171_s25 = smov (%p33_p12, %s31_s25), 0  ;;  %p68_p6 = scmp.ne.s32.totalorder %s775_s11, %s771_s10 }
  0x1f   : > { %p69_p4 = scmp.eq.s32.totalorder %s787_s14, 0  ;;  %s56_s30 = ssub.s32 %s783_s13, %s1171_s25 }
  0x20   : > { %p575_p9 = scmp.lt.s32.totalorder %s787_s14, 2  ;;  %p59_p10 = scmp.eq.s32.totalorder %s56_s30, 0 }
  0x21   : > { %p70_p13 = por %p69_p4, %p68_p6  ;;  %p906_p0 = por %p858_p2, %p68_p6 }
  0x22   : > { %s137_s4 = sand.u32 1, %s775_s11   ;;  %s552_s7 = sshll.u32 %s783_s13, 8 }
  0x23   : > { %s912_s5 = scalar_select %p59_p10, %s775_s11, %s61_s26  }
  0x24   : > { %s540_s6 = sshll.u32 %s137_s4, 4  ;;  %s149_s16 = scalar_lea.hbm %s1137_s1, %s552_s7 }
  0x25   : > { %s141_s22 = scalar_lea.vmem [#allocation5], %s540_s6  ;;  %p918_p11 = pnand %p575_p9, %p70_p13 }
  0x26   : > { %s151_s23 = sshll.u32 %s141_s22, 4  ;;  %s138_s18 = scalar_lea.sflag [#allocation6], %s137_s4  ;;  %s152_s23 = int_to_ptr.vmem [resolvable:$true] %s151_s23 }
  0x27   : > { %p677_p2 = pneg %p918_p11  ;;  %s688_s27 = scalar_lea.vmem %s152_s23, 256 }
  0x28   : > { %p689_p12 = scmp.ne.s32.totalorder %s152_s23, %s688_s27  ;;  %s790_s26 = smov [#allocation5]  }
  0x29   : > { %s693_s28 = sshll.u32 %s790_s26, 4  ;;  %s694_s28 = int_to_ptr.vmem [resolvable:$false] %s693_s28 }
  0x2a   : > { %p691_p3 = pnand %p689_p12, %p677_p2  ;;  %s695_s29 = scalar_lea.vmem %s694_s28, 512 }
  0x2b   : > { %p696_p7 = scmp.lt.s32.totalorder %s152_s23, %s694_s28  ;;  %p697_p6 = scmp.lt.s32.totalorder %s695_s29, %s688_s27 }
  0x2c   : > { %p692_p5 = pneg %p691_p3 }
  0x2d   : > { %p698_p4 = por %p697_p6, %p696_p7 }
  0x2f   : > { %p699_p10 = pnand %p698_p4, %p692_p5 }
  0x31   : > { %702 = shalt.err (!%p699_p10)
}
  0x32   : > { %569 = dma.hbm_to_vmem [thread:$0]  (!%p918_p11), %s149_s16, 256, %s152_s23, %s138_s18  }
  0x33   : > { %160 = sbr.rel (%p874_p8) target bundleno = 337 (0x151), region = 28 }
  0x38   : > { %754 = dma.done.wait (%p854_p1), [#allocation3], 128  }
  0x39   : > { %756 = vsyncadd (%p854_p1), [#allocation3], 4294967168  ;;  %s933_s30 = sand.u32 1, %s771_s10   ;;  %p1148_p9 = scmp.ne.s32.totalorder %s1142_s19, 0 }
  0x3a   : > { %s545_s4 = sshll.u32 %s933_s30, 4  ;;  %s167_s6 = scalar_lea.sflag [#allocation6], %s933_s30 }
  0x3b   : > { %s170_s7 = scalar_lea.vmem [#allocation5], %s545_s4 }
  0x3c   : > { %758 = dma.done.wait (%p1148_p9), %s167_s6, 256  }
  0x3d   : > { %760 = vsyncadd (%p1148_p9), %s167_s6, 4294967040  ;;  %v791_v0 = vmov 1   ;;  %v792_v1 = vmov 0   ;;  %v943_v2 = vld [vmem:[%s170_s7] sm:$0xff]  ;;  %s793_s17 = smov 96   ;;  %s794_s21 = smov 32   ;;  %v196_v12 = vlaneseq }
  0x3e   : > { %641 = vset.pattern.permute.xlu1 %v791_v0  ;;  %640 = vset.pattern.permute.xlu0 %v792_v1  ;;  %v947_v3 = vld [vmem:[%s170_s7 + $0x8] sm:$0xff]  ;;  %v795_v5 = vmov 2   ;;  %v796_v6 = vmov 3   ;;  %s797_s19 = smov 2   ;;  %v798_v7 = vmov 4   ;;  %v799_v8 = vmov 6  }
  0x3f   : > { %357 = vrot.lane.b32.xlu1 %v943_v2, %s793_s17  ;;  %245 = vrot.lane.b32.xlu0 %v943_v2, %s794_s21  ;;  %v195_v4 = vld [vmem:[#allocation2] sm:$0xff]  ;;  %v800_v9 = vmov 5   ;;  %v801_v10 = vmov 8   ;;  %s802_s8 = smov 126   ;;  %v803_v11 = vmov 7   ;;  %v956_v13 = vand.u32 127, %v196_v12 }
  0x40   : > { %s553_s15 = sshll.u32 %s779_s12, 8  ;;  %s190_s16 = scalar_lea.vmem [#allocation7], %s545_s4 }
  0x41   : > { %vm249_vm0 = vcmp.lt.s32.totalorder %v956_v13, 32  ;;  %vm361_vm1 = vcmp.lt.s32.totalorder %v956_v13, 96  ;;  %v199_v32 = vand.u32 15, %v956_v13  ;;  %v977_v33 = vadd.s32 128, %v956_v13  ;;  %s437_s22 = sshll.u32 %s190_s16, 4  ;;  %s1094_s18 = scalar_lea.hbm %s1138_s2, %s553_s15  ;;  %s438_s22 = int_to_ptr.vmem [resolvable:$true] %s437_s22 }
  0x42   : > { %vm201_vm2 = vcmp.ge.s32.totalorder %v956_v13, 32  ;;  %vm256_vm4 = vcmp.lt.s32.totalorder %v956_v13, 2  ;;  %vm292_vm10 = vcmp.lt.s32.totalorder %v956_v13, 126  ;;  %s421_s27 = scalar_lea.sflag [#allocation4], %s933_s30  ;;  %s703_s12 = scalar_lea.vmem %s438_s22, 256 }
  0x43   : > { %359 = vrot.lane.b32.xlu1 %v947_v3, %s793_s17  ;;  %247 = vrot.lane.b32.xlu0 %v947_v3, %s794_s21  ;;  %v200_v35 = vand.u32 15, %v977_v33  ;;  %vm983_vm3 = vcmp.ge.s32.totalorder %v199_v32, 2  ;;  %vm1002_vm7 = vcmp.lt.s32.totalorder %v199_v32, 14  ;;  %vm236_vm11 = vcmp.lt.s32.totalorder %v977_v33, 224  ;;  %p704_p1 = scmp.ne.s32.totalorder %s438_s22, %s703_s12  ;;  %s804_s26 = smov [#allocation7]  }
  0x44   : > { %vm213_vm5 = vmand %vm201_vm2, %vm983_vm3  ;;  %s707_s28 = sshll.u32 %s804_s26, 4  ;;  %s708_s28 = int_to_ptr.vmem [resolvable:$false] %s707_s28 }
  0x45   : > { %vm996_vm6 = vcmp.ge.s32.totalorder %v200_v35, 2  ;;  %vm1016_vm8 = vmand %vm201_vm2, %vm1002_vm7  ;;  %vm1020_vm9 = vcmp.lt.s32.totalorder %v200_v35, 14  ;;  %p705_p8 = pnand %p704_p1, %p906_p0  ;;  %s709_s29 = scalar_lea.vmem %s708_s28, 512 }
  0x46   : > { %vm1046_vm12 = vmand %vm236_vm11, %vm996_vm6  ;;  %p710_p11 = scmp.lt.s32.totalorder %s438_s22, %s708_s28  ;;  %p711_p2 = scmp.lt.s32.totalorder %s709_s29, %s703_s12 }
  0x47   : > { %281 = vperm.xlu1 %641, %v195_v4   ;;  %267 = vperm.xlu0 %640, %v195_v4   ;;  %vm1073_vm13 = vmand %vm236_vm11, %vm1020_vm9  ;;  %p706_p13 = pneg %p705_p8 }
  0x48   : > { %p712_p12 = por %p711_p2, %p710_p11 }
  0x4a   : > { %p713_p3 = pnand %p712_p12, %p706_p13 }
  0x4b   : > { %642 = vset.pattern.permute.xlu1 %v795_v5  ;;  %643 = vset.pattern.permute.xlu0 %v796_v6 }
  0x4c   : > { %302 = vperm.xlu1 %642, %v195_v4   ;;  %322 = vperm.xlu0 %643, %v195_v4  }
  0x50   : > { %309 = vrot.lane.b32.xlu1 %v943_v2, %s797_s19  ;;  %644 = vset.pattern.permute.xlu0 %v798_v7 }
  0x51   : > { %646 = vset.pattern.permute.xlu1 %v799_v8  ;;  %330 = vperm.xlu0 %644, %v195_v4  }
  0x54   : > { %311 = vrot.lane.b32.xlu1 %v947_v3, %s797_s19 }
  0x55   : > { %645 = vset.pattern.permute.xlu0 %v800_v9 }
  0x56   : > { %350 = vperm.xlu0 %645, %v195_v4  }
  0x58   : > { %377 = vperm.xlu1 %646, %v195_v4  }
  0x5a   : > { %648 = vset.pattern.permute.xlu0 %v801_v10 }
  0x5c   : > { %337 = vrot.lane.b32.xlu1 %v943_v2, %s802_s8 }
  0x5d   : > { %647 = vset.pattern.permute.xlu1 %v803_v11 }
  0x60   : > { %391 = vperm.xlu1 %647, %v195_v4  }
  0xb1   : > { %v246_v14 = vpop.permute.xlu0 %245  ;;  %v358_v16 = vpop.permute.xlu1 %357 }
  0xb5   : > { %v248_v15 = vpop.permute.xlu0 %247  ;;  %v360_v19 = vpop.permute.xlu1 %359 }
  0xb6   : > { %v251_v17 = vsel %vm249_vm0, %v248_v15, %v246_v14  ;;  %v250_v18 = vsel %vm249_vm0, %v246_v14, %v248_v15  ;;  %v963_v20 = vsel %vm361_vm1, %v358_v16, %v360_v19  ;;  %v967_v21 = vsel %vm361_vm1, %v360_v19, %v358_v16 }
  0xb7   : > { %252 = vrot.lane.b32.xlu0 %v251_v17, %s797_s19  ;;  %254 = vrot.lane.b32.xlu1 %v250_v18, %s797_s19  ;;  %v278_v51 = vsel %vm201_vm2, %v251_v17, 0.0 }
  0xbb   : > { %339 = vrot.lane.b32.xlu0 %v947_v3, %s802_s8  ;;  %288 = vrot.lane.b32.xlu1 %v251_v17, %s802_s8 }
  0xbf   : > { %364 = vrot.lane.b32.xlu0 %v963_v20, %s797_s19  ;;  %290 = vrot.lane.b32.xlu1 %v250_v18, %s802_s8 }
  0xc2   : > { %v282_v22 = vpop.permute.xlu1 %281  ;;  %v268_v26 = vpop.permute.xlu0 %267 }
  0xc3   : > { %366 = vrot.lane.b32.xlu1 %v967_v21, %s797_s19  ;;  %411 = vperm.xlu0 %648, %v195_v4   ;;  %v284_v53 = vmul.f32 %v282_v22, %v278_v51  ;;  %v285_v54 = vmul.f32 %v282_v22, %v250_v18 }
  0xc7   : > { %398 = vrot.lane.b32.xlu1 %v963_v20, %s802_s8  ;;  %v303_v23 = vpop.permute.xlu1 %302  ;;  %v323_v28 = vpop.permute.xlu0 %322 }
  0xcb   : > { %400 = vrot.lane.b32.xlu1 %v967_v21, %s802_s8  ;;  %v310_v24 = vpop.permute.xlu1 %309 }
  0xcc   : > { %v331_v29 = vpop.permute.xlu0 %330 }
  0xcd   : > { %v333_v19 = vmul.f32 %v331_v29, %v943_v2  ;;  %v334_v22 = vmul.f32 %v331_v29, %v947_v3 }
  0xcf   : > { %v312_v25 = vpop.permute.xlu1 %311 }
  0xd0   : > { %v313_v46 = vsel %vm256_vm4, %v310_v24, %v312_v25  ;;  %v314_v47 = vsel %vm256_vm4, %v312_v25, %v310_v24 }
  0xd1   : > { %v351_v31 = vpop.permute.xlu0 %350  ;;  %v319_v57 = vsel %vm983_vm3, %v314_v47, 0.0  ;;  %v320_v58 = vsel %vm996_vm6, %v313_v46, 0.0 }
  0xd2   : > { %v325_v7 = vmul.f32 %v323_v28, %v319_v57  ;;  %v326_v8 = vmul.f32 %v323_v28, %v320_v58 }
  0xd3   : > { %v973_v27 = vpop.permute.xlu1 %377 }
  0xd7   : > { %v338_v30 = vpop.permute.xlu1 %337 }
  0xdb   : > { %v979_v34 = vpop.permute.xlu1 %391 }
 0x129   : > { %v255_v37 = vpop.permute.xlu1 %254  ;;  %v253_v38 = vpop.permute.xlu0 %252 }
 0x12a   : > { %v257_v39 = vsel %vm256_vm4, %v253_v38, %v255_v37  ;;  %v258_v40 = vsel %vm256_vm4, %v255_v37, %v253_v38  ;;  %v389_v38 = vsel %vm236_vm11, %v967_v21, 0.0 }
 0x12b   : > { %v263_v42 = vsel %vm213_vm5, %v258_v40, 0.0  ;;  %v264_v43 = vsel %vm996_vm6, %v257_v39, 0.0  ;;  %v394_v39 = vmul.f32 %v979_v34, %v963_v20  ;;  %v395_v21 = vmul.f32 %v979_v34, %v389_v38 }
 0x12c   : > { %v270_v48 = vmul.f32 %v268_v26, %v263_v42  ;;  %v271_v49 = vmul.f32 %v268_v26, %v264_v43 }
 0x12d   : > { %v289_v44 = vpop.permute.xlu1 %288  ;;  %v340_v50 = vpop.permute.xlu0 %339 }
 0x12e   : > { %v286_v61 = vadd.f32 %v284_v53, %v270_v48  ;;  %v287_v62 = vadd.f32 %v285_v54, %v271_v49  ;;  %v341_v1 = vsel %vm292_vm10, %v338_v30, %v340_v50  ;;  %v342_v4 = vsel %vm292_vm10, %v340_v50, %v338_v30 }
 0x12f   : > { %v347_v17 = vsel %vm1002_vm7, %v341_v1, 0.0  ;;  %v348_v18 = vsel %vm1020_vm9, %v342_v4, 0.0 }
 0x130   : > { %v353_v30 = vmul.f32 %v351_v31, %v347_v17  ;;  %v354_v32 = vmul.f32 %v351_v31, %v348_v18 }
 0x131   : > { %v291_v56 = vpop.permute.xlu1 %290  ;;  %v365_v9 = vpop.permute.xlu0 %364 }
 0x132   : > { %v293_v59 = vsel %vm292_vm10, %v289_v44, %v291_v56  ;;  %v294_v60 = vsel %vm292_vm10, %v291_v56, %v289_v44 }
 0x133   : > { %v299_v63 = vsel %vm1016_vm8, %v293_v59, 0.0  ;;  %v300_v0 = vsel %vm1020_vm9, %v294_v60, 0.0 }
 0x134   : > { %v305_v5 = vmul.f32 %v303_v23, %v299_v63  ;;  %v306_v6 = vmul.f32 %v303_v23, %v300_v0 }
 0x135   : > { %v367_v10 = vpop.permute.xlu1 %366 }
 0x136   : > { %v307_v11 = vadd.f32 %v305_v5, %v286_v61  ;;  %v308_v12 = vadd.f32 %v306_v6, %v287_v62  ;;  %v368_v15 = vsel %vm256_vm4, %v365_v9, %v367_v10  ;;  %v369_v16 = vsel %vm256_vm4, %v367_v10, %v365_v9 }
 0x137   : > { %v374_v25 = vsel %vm983_vm3, %v369_v16, 0.0  ;;  %v375_v26 = vsel %vm1046_vm12, %v368_v15, 0.0 }
 0x138   : > { %v327_v23 = vadd.f32 %v325_v7, %v307_v11  ;;  %v328_v24 = vadd.f32 %v326_v8, %v308_v12  ;;  %v380_v29 = vmul.f32 %v973_v27, %v374_v25  ;;  %v381_v36 = vmul.f32 %v973_v27, %v375_v26 }
 0x139   : > { %v399_v28 = vpop.permute.xlu1 %398 }
 0x13a   : > { %v335_v35 = vadd.f32 %v333_v19, %v327_v23  ;;  %v336_v37 = vadd.f32 %v334_v22, %v328_v24 }
 0x13c   : > { %v355_v2 = vadd.f32 %v353_v30, %v335_v35  ;;  %v356_v3 = vadd.f32 %v354_v32, %v336_v37 }
 0x13d   : > { %v401_v40 = vpop.permute.xlu1 %400 }
 0x13e   : > { %v382_v41 = vadd.f32 %v380_v29, %v355_v2  ;;  %v383_v42 = vadd.f32 %v381_v36, %v356_v3  ;;  %v402_v43 = vsel %vm292_vm10, %v399_v28, %v401_v40  ;;  %v403_v27 = vsel %vm292_vm10, %v401_v40, %v399_v28  ;;  %v412_v44 = vpop.permute.xlu0 %411 }
 0x13f   : > { %v408_v33 = vsel %vm1002_vm7, %v402_v43, 0.0  ;;  %v409_v46 = vsel %vm1073_vm13, %v403_v27, 0.0 }
 0x140   : > { %v396_v20 = vadd.f32 %v394_v39, %v382_v41  ;;  %v397_v34 = vadd.f32 %v395_v21, %v383_v42  ;;  %v414_v47 = vmul.f32 %v412_v44, %v408_v33  ;;  %v415_v48 = vmul.f32 %v412_v44, %v409_v46 }
 0x142   : > { %v416_v49 = vadd.f32 %v414_v47, %v396_v20  ;;  %v417_v13 = vadd.f32 %v415_v48, %v397_v34 }
 0x144   : > { %418 = vst [vmem:[%s190_s16] sm:$0xff] %v416_v49  ;;  %419 = vst [vmem:[%s190_s16 + $0x8] sm:$0xff] %v417_v13 }
 0x145   : > { %716 = shalt.err (!%p713_p3)
}
 0x146   : > { %s717_s4 = scalar_lea.hbm %s1094_s18, 256  ;;  %s721_s7 = scalar_lea.hbm %s1138_s2, 512 }
 0x147   : > { %p718_p5 = scmp.ne.s32.totalorder %s1094_s18, %s717_s4  ;;  %p722_p4 = scmp.lt.s32.totalorder %s1094_s18, %s1138_s2 }
 0x148   : > { %p723_p10 = scmp.lt.s32.totalorder %s721_s7, %s717_s4 }
 0x149   : > { %p719_p7 = pnand %p718_p5, %p906_p0 }
 0x14a   : > { %p724_p9 = por %p723_p10, %p722_p4 }
 0x14b   : > { %p720_p6 = pneg %p719_p7 }
 0x14d   : > { %p725_p1 = pnand %p724_p9, %p720_p6 }
 0x14f   : > { %728 = shalt.err (!%p725_p1)
}
 0x150   : > { %560 = dma.vmem_to_hbm [thread:$0]  (%p906_p0), %s438_s22, 256, %s1094_s18, %s421_s27  }
 0x151 PF: > { %s449_s19 = sand.u32 1, %s767_s9   ;;  %p1163_p8 = scmp.ne.s32.totalorder %s1143_s20, 0 }
 0x152   : > { %p1164_p13 = scmp.ge.s32.totalorder %s787_s14, 2  ;;  %s450_s8 = scalar_lea.sflag [#allocation4], %s449_s19 }
 0x154   : > { %p571_p11 = pnand %p1164_p13, %p1163_p8 }
 0x156   : > { %p572_p2 = pneg %p571_p11 }
 0x158   : > { %762 = dma.done.wait (%p572_p2), %s450_s8, 256  }
 0x159   : > { %764 = vsyncadd (%p572_p2), %s450_s8, 4294967040  ;;  %s19_s14 = sadd.s32 1, %s787_s14   ;;  %s1165_s9 = smov %s771_s10 }
 0x15a   : > { %p16_p12 = scmp.ge.s32.totalorder %s19_s14, 4   ;;  %s1166_s10 = smov %s775_s11 }
 0x15b   : > { %s1167_s11 = smov %s912_s5  ;;  %s1168_s12 = smov %s783_s13 }
 0x15c   : > { %s1169_s13 = smov %s1171_s25  ;;  %18 = sbr.rel (!%p16_p12) target bundleno = 7 (0x7), region = 79 }
 0x161   :  { %455 = vsyncpa [#allocation3], 1 }
 0x162   :  { %457 = vsyncpa [#allocation3 + $0x1], 1 }
 0x163   :  { %458 = vsyncpa [#allocation6], 1 }
 0x164   :  { %460 = vsyncpa [#allocation6 + $0x1], 1 }
 0x165   :  { %461 = vsyncpa [#allocation4], 1 }
 0x166   :  { %463 = vsyncpa [#allocation4 + $0x1], 1 }

</bundles_post_ra>
